<compile_context>
chip_gen: v7x
topology: tpu7x:2x2x1
jax: 0.10.0
libtpu: 0.0.40
codegen_flags: <defaults>
</compile_context>

<pallas_src>
import functools

import jax
import jax.numpy as jnp
from jax.experimental import pallas as pl
from jax.experimental.pallas import tpu as pltpu


def _round_up(n, m):
    return ((n + m - 1) // m) * m


def _make_kernel(dim, L, activation, mxu_dtype):
    """Build the fused forward + BCE kernel for one batch tile."""
    if activation == "relu":
        act = lambda v: jnp.maximum(v, 0.0)
    elif activation == "leaky":
        act = lambda v: jnp.where(v >= 0.0, v, 0.01 * v)
    elif activation == "sigmoid":
        act = jax.nn.sigmoid
    elif activation == "tanh":
        act = jnp.tanh
    else:
        raise ValueError(f"unsupported activation: {activation}")

    r_w2 = dim          # W1 occupies rows [0, dim)
    r_w3 = dim + L      # W2 occupies rows [dim, dim+L)
    r_end = dim + 2 * L  # W3 occupies rows [dim+L, dim+2L)

    def kernel(x_ref, y_ref, w_ref, v_ref, logits_ref, bce_ref):
        # x: [TB, dim] batch tile (batch on sublanes, features on lanes).
        x = x_ref[...].astype(mxu_dtype)

        # Static slices of the packed slabs (views, no runtime cost).
        b1 = v_ref[0:1, :]            # [1, L]
        b2 = v_ref[1:2, :]
        b3 = v_ref[2:3, :]
        w4 = v_ref[3:4, :]            # final-layer weight, lane-dense [1, L]
        b4 = v_ref[4:5, 0:1]          # [1, 1]

        # Hidden layers on the MXU (f32 accumulation); bias-add + activation on the VPU.
        h = act(jnp.dot(x, w_ref[0:r_w2, :],
                        preferred_element_type=jnp.float32) + b1)
        h = act(jnp.dot(h.astype(mxu_dtype), w_ref[r_w2:r_w3, :],
                        preferred_element_type=jnp.float32) + b2)
        h = act(jnp.dot(h.astype(mxu_dtype), w_ref[r_w3:r_end, :],
                        preferred_element_type=jnp.float32) + b3)
        # h: [TB, L] (padding lanes are exact zeros)

        # Final 4*dim -> 1 layer: VPU multiply + XLU lane reduction
        # (avoids a pathological N=1 MXU matmul).
        z = jnp.sum(h * w4, axis=-1, keepdims=True) + b4          # [TB, 1]

        # Post-sigmoid probabilities (the PyTorch module calls these "logits").
        p = jax.nn.sigmoid(z)
        logits_ref[...] = p

        # Per-element BCELoss terms (mean is taken by the caller), with PyTorch's
        # clamp of the log terms at -100.
        y = y_ref[...]                                             # [TB, 1]
        log_p = jnp.maximum(jnp.log(p), -100.0)
        log_1mp = jnp.maximum(jnp.log(1.0 - p), -100.0)
        bce_ref[...] = -(y * log_p + (1.0 - y) * log_1mp)

    return kernel


def make_discriminator(dim, *, activation="relu", batch_tile=8, mxu_dtype=jnp.float32):
    """Returns a jitted forward(x, labels_col, wslab, vslab) -> (probs [B], loss scalar)."""
    assert dim % 8 == 0, "dim must be a multiple of 8 (sublane alignment)"
    L = _round_up(4 * dim, 128)
    rows_w = dim + 2 * L
    kernel = _make_kernel(dim, L, activation, mxu_dtype)

    def forward(x, labels_col, wslab, vslab):
        B, d = x.shape
        assert d == dim
        assert B % batch_tile == 0
        n_tiles = B // batch_tile

        logits_col, bce_col = pl.pallas_call(
            kernel,
            grid=(n_tiles,),
            out_shape=(
                jax.ShapeDtypeStruct((B, 1), jnp.float32),   # probabilities
                jax.ShapeDtypeStruct((B, 1), jnp.float32),   # per-element BCE
            ),
            in_specs=[
                pl.BlockSpec((batch_tile, dim), lambda i: (i, 0)),   # x tile
                pl.BlockSpec((batch_tile, 1), lambda i: (i, 0)),     # labels tile
                pl.BlockSpec((rows_w, L), lambda i: (0, 0)),         # resident weight slab
                pl.BlockSpec((8, L), lambda i: (0, 0)),              # resident bias/w4 slab
            ],
            out_specs=(
                pl.BlockSpec((batch_tile, 1), lambda i: (i, 0)),
                pl.BlockSpec((batch_tile, 1), lambda i: (i, 0)),
            ),
            compiler_params=pltpu.CompilerParams(
                dimension_semantics=("parallel",)),
        )(x, labels_col, wslab, vslab)

        probs = logits_col[:, 0]          # squeeze(1), like the PyTorch module
        loss = jnp.mean(bce_col)          # BCELoss(reduction='mean'), fused under jit
        return probs, loss

    return jax.jit(forward)


def init_params(key, dim, mxu_dtype=jnp.float32):
    """nn.Linear-style init (uniform +/- 1/sqrt(fan_in)), packed into two padded slabs.

    wslab [dim + 2L, L] (mxu_dtype): W1 rows [0,dim), W2 rows [dim,dim+L), W3 rows [dim+L,dim+2L).
    vslab [8, L] (f32): rows 0..2 = b1,b2,b3; row 3 = final weight (lane-dense); row 4 = b4 bcast.
    Also returns the raw (unpacked) f32 parameters for reference checking.
    """
    L = _round_up(4 * dim, 128)
    sizes = [(dim, 2 * dim), (2 * dim, 2 * dim), (2 * dim, 4 * dim), (4 * dim, 1)]
    keys = jax.random.split(key, 2 * len(sizes))
    ws, bs = [], []
    for i, (fin, fout) in enumerate(sizes):
        bound = 1.0 / (fin ** 0.5)
        ws.append(jax.random.uniform(keys[2 * i], (fin, fout), jnp.float32, -bound, bound))
        bs.append(jax.random.uniform(keys[2 * i + 1], (fout,), jnp.float32, -bound, bound))

    wslab = jnp.zeros((dim + 2 * L, L), jnp.float32)
    wslab = wslab.at[0:dim, 0:2 * dim].set(ws[0])
    wslab = wslab.at[dim:dim + 2 * dim, 0:2 * dim].set(ws[1])
    wslab = wslab.at[dim + L:dim + L + 2 * dim, 0:4 * dim].set(ws[2])
    wslab = wslab.astype(mxu_dtype)

    vslab = jnp.zeros((8, L), jnp.float32)
    vslab = vslab.at[0, 0:2 * dim].set(bs[0])
    vslab = vslab.at[1, 0:2 * dim].set(bs[1])
    vslab = vslab.at[2, 0:4 * dim].set(bs[2])
    vslab = vslab.at[3, 0:4 * dim].set(ws[3][:, 0])   # final weight, lane-dense
    vslab = vslab.at[4, :].set(bs[3][0])              # b4 broadcast across lanes

    return wslab, vslab, (ws, bs)


if __name__ == "__main__":
    dim = 32
    batch = 32          # 4 batch tiles of 8 -> exercises the resident-weight grid

    key = jax.random.PRNGKey(0)
    k_x, k_y, k_p = jax.random.split(key, 3)

    x = jax.random.normal(k_x, (batch, dim), dtype=jnp.float32)
    # Labels are produced directly in the (B, 1) f32 column layout the kernel consumes
    # (no per-call reshape/cast marshalling).
    labels = jax.random.bernoulli(k_y, 0.5, (batch, 1)).astype(jnp.float32)

    wslab, vslab, (ws, bs) = init_params(k_p, dim)
    fwd = make_discriminator(dim, activation="relu", batch_tile=8)

    probs, loss = fwd(x, labels, wslab, vslab)
    jax.block_until_ready((probs, loss))

    # Pure-JAX reference check (unpacked f32 params).
    w1, w2, w3, w4 = ws
    b1, b2, b3, b4 = bs
    h = jnp.maximum(x @ w1 + b1, 0.0)
    h = jnp.maximum(h @ w2 + b2, 0.0)
    h = jnp.maximum(h @ w3 + b3, 0.0)
    p_ref = jax.nn.sigmoid((h @ w4 + b4)[:, 0])
    y = labels[:, 0]
    loss_ref = jnp.mean(-(y * jnp.maximum(jnp.log(p_ref), -100.0)
                          + (1.0 - y) * jnp.maximum(jnp.log(1.0 - p_ref), -100.0)))

    assert jnp.allclose(probs, p_ref, atol=1e-5), "logits mismatch"
    assert jnp.allclose(loss, loss_ref, atol=1e-5), "loss mismatch"

    print("KERNEL_OK")
</pallas_src>

<mosaic_0001>
module attributes {stable_mosaic.version = 11 : i64} {
  func.func @kernel(%arg0: i32, %arg1: memref<8x32xf32, #tpu.memory_space<vmem>>, %arg2: memref<8x1xf32, #tpu.memory_space<vmem>>, %arg3: memref<288x128xf32, #tpu.memory_space<vmem>>, %arg4: memref<8x128xf32, #tpu.memory_space<vmem>>, %arg5: memref<8x1xf32, #tpu.memory_space<vmem>>, %arg6: memref<8x1xf32, #tpu.memory_space<vmem>>) attributes {dimension_semantics = [#tpu.dimension_semantics<parallel>], iteration_bounds = array<i64: 4>, scalar_prefetch = 0 : i64, scratch_operands = 0 : i64, tpu.core_type = #tpu.core_type<tc>, window_params = [{transform_indices = @transform_0, window_bounds = array<i64: 8, 32>}, {transform_indices = @transform_1, window_bounds = array<i64: 8, 1>}, {pipeline_mode = #tpu.pipeline_mode<synchronous>, transform_indices = @transform_2, window_bounds = array<i64: 288, 128>}, {pipeline_mode = #tpu.pipeline_mode<synchronous>, transform_indices = @transform_3, window_bounds = array<i64: 8, 128>}, {transform_indices = @transform_4, window_bounds = array<i64: 8, 1>}, {transform_indices = @transform_5, window_bounds = array<i64: 8, 1>}]} {
    %c0 = arith.constant 0 : index
    %c0_0 = arith.constant 0 : index
    %0 = vector.load %arg1[%c0, %c0_0] : memref<8x32xf32, #tpu.memory_space<vmem>>, vector<8x32xf32>
    %c0_1 = arith.constant 0 : index
    %c0_2 = arith.constant 0 : index
    %1 = vector.load %arg4[%c0_1, %c0_2] : memref<8x128xf32, #tpu.memory_space<vmem>>, vector<1x128xf32>
    %c1 = arith.constant 1 : index
    %c0_3 = arith.constant 0 : index
    %2 = vector.load %arg4[%c1, %c0_3] : memref<8x128xf32, #tpu.memory_space<vmem>>, vector<1x128xf32>
    %c2 = arith.constant 2 : index
    %c0_4 = arith.constant 0 : index
    %3 = vector.load %arg4[%c2, %c0_4] : memref<8x128xf32, #tpu.memory_space<vmem>>, vector<1x128xf32>
    %c3 = arith.constant 3 : index
    %c0_5 = arith.constant 0 : index
    %4 = vector.load %arg4[%c3, %c0_5] : memref<8x128xf32, #tpu.memory_space<vmem>>, vector<1x128xf32>
    %c4 = arith.constant 4 : index
    %c0_6 = arith.constant 0 : index
    %5 = vector.load %arg4[%c4, %c0_6] : memref<8x128xf32, #tpu.memory_space<vmem>>, vector<1x1xf32>
    %c0_7 = arith.constant 0 : index
    %c0_8 = arith.constant 0 : index
    %6 = vector.load %arg3[%c0_7, %c0_8] : memref<288x128xf32, #tpu.memory_space<vmem>>, vector<32x128xf32>
    %cst = arith.constant dense<0.000000e+00> : vector<8x128xf32>
    %7 = tpu.matmul %0, %6, %cst {dimension_numbers = #tpu.dot_dimension_numbers<[1], [0], [0], [1], [0, 0, 1, 1], [], []>} : vector<8x32xf32>, vector<32x128xf32>, vector<8x128xf32> -> vector<8x128xf32>
    %8 = vector.broadcast %1 : vector<1x128xf32> to vector<8x128xf32>
    %9 = arith.addf %7, %8 : vector<8x128xf32>
    %cst_9 = arith.constant 0.000000e+00 : f32
    %10 = vector.broadcast %cst_9 : f32 to vector<8x128xf32>
    %11 = arith.maximumf %9, %10 : vector<8x128xf32>
    %c32 = arith.constant 32 : index
    %c0_10 = arith.constant 0 : index
    %12 = vector.load %arg3[%c32, %c0_10] : memref<288x128xf32, #tpu.memory_space<vmem>>, vector<128x128xf32>
    %cst_11 = arith.constant dense<0.000000e+00> : vector<8x128xf32>
    %13 = tpu.matmul %11, %12, %cst_11 {dimension_numbers = #tpu.dot_dimension_numbers<[1], [0], [0], [1], [0, 0, 1, 1], [], []>} : vector<8x128xf32>, vector<128x128xf32>, vector<8x128xf32> -> vector<8x128xf32>
    %14 = vector.broadcast %2 : vector<1x128xf32> to vector<8x128xf32>
    %15 = arith.addf %13, %14 : vector<8x128xf32>
    %cst_12 = arith.constant 0.000000e+00 : f32
    %16 = vector.broadcast %cst_12 : f32 to vector<8x128xf32>
    %17 = arith.maximumf %15, %16 : vector<8x128xf32>
    %c160 = arith.constant 160 : index
    %c0_13 = arith.constant 0 : index
    %18 = vector.load %arg3[%c160, %c0_13] : memref<288x128xf32, #tpu.memory_space<vmem>>, vector<128x128xf32>
    %cst_14 = arith.constant dense<0.000000e+00> : vector<8x128xf32>
    %19 = tpu.matmul %17, %18, %cst_14 {dimension_numbers = #tpu.dot_dimension_numbers<[1], [0], [0], [1], [0, 0, 1, 1], [], []>} : vector<8x128xf32>, vector<128x128xf32>, vector<8x128xf32> -> vector<8x128xf32>
    %20 = vector.broadcast %3 : vector<1x128xf32> to vector<8x128xf32>
    %21 = arith.addf %19, %20 : vector<8x128xf32>
    %cst_15 = arith.constant 0.000000e+00 : f32
    %22 = vector.broadcast %cst_15 : f32 to vector<8x128xf32>
    %23 = arith.maximumf %21, %22 : vector<8x128xf32>
    %24 = vector.broadcast %4 : vector<1x128xf32> to vector<8x128xf32>
    %25 = arith.mulf %23, %24 : vector<8x128xf32>
    %cst_16 = arith.constant dense<0.000000e+00> : vector<8xf32>
    %26 = vector.multi_reduction <add>, %25, %cst_16 [1] : vector<8x128xf32> to vector<8xf32>
    %27 = vector.shape_cast %26 : vector<8xf32> to vector<8x1xf32>
    %28 = vector.broadcast %5 : vector<1x1xf32> to vector<8x1xf32>
    %29 = arith.addf %27, %28 : vector<8x1xf32>
    %30 = arith.negf %29 : vector<8x1xf32>
    %31 = math.exp %30 : vector<8x1xf32>
    %cst_17 = arith.constant 1.000000e+00 : f32
    %32 = vector.broadcast %cst_17 : f32 to vector<8x1xf32>
    %33 = arith.addf %32, %31 : vector<8x1xf32>
    %34 = arith.divf %32, %33 : vector<8x1xf32>
    %c0_18 = arith.constant 0 : index
    %c0_19 = arith.constant 0 : index
    %35 = vector.load %arg5[%c0_18, %c0_19] : memref<8x1xf32, #tpu.memory_space<vmem>>, vector<8x1xf32>
    tpu.vector_store %arg5[%c0_18, %c0_19], %34 {strides = array<i32>} : memref<8x1xf32, #tpu.memory_space<vmem>>, vector<8x1xf32>,
    %c0_20 = arith.constant 0 : index
    %c0_21 = arith.constant 0 : index
    %36 = vector.load %arg2[%c0_20, %c0_21] : memref<8x1xf32, #tpu.memory_space<vmem>>, vector<8x1xf32>
    %37 = math.log %34 : vector<8x1xf32>
    %cst_22 = arith.constant -1.000000e+02 : f32
    %38 = vector.broadcast %cst_22 : f32 to vector<8x1xf32>
    %39 = arith.maximumf %37, %38 : vector<8x1xf32>
    %cst_23 = arith.constant 1.000000e+00 : f32
    %40 = vector.broadcast %cst_23 : f32 to vector<8x1xf32>
    %41 = arith.subf %40, %34 : vector<8x1xf32>
    %42 = math.log %41 : vector<8x1xf32>
    %cst_24 = arith.constant -1.000000e+02 : f32
    %43 = vector.broadcast %cst_24 : f32 to vector<8x1xf32>
    %44 = arith.maximumf %42, %43 : vector<8x1xf32>
    %45 = arith.mulf %36, %39 : vector<8x1xf32>
    %cst_25 = arith.constant 1.000000e+00 : f32
    %46 = vector.broadcast %cst_25 : f32 to vector<8x1xf32>
    %47 = arith.subf %46, %36 : vector<8x1xf32>
    %48 = arith.mulf %47, %44 : vector<8x1xf32>
    %49 = arith.addf %45, %48 : vector<8x1xf32>
    %cst_26 = arith.constant 0.000000e+00 : f32
    %50 = vector.broadcast %cst_26 : f32 to vector<8x1xf32>
    %51 = arith.subf %50, %49 : vector<8x1xf32>
    %c0_27 = arith.constant 0 : index
    %c0_28 = arith.constant 0 : index
    %52 = vector.load %arg6[%c0_27, %c0_28] : memref<8x1xf32, #tpu.memory_space<vmem>>, vector<8x1xf32>
    tpu.vector_store %arg6[%c0_27, %c0_28], %51 {strides = array<i32>} : memref<8x1xf32, #tpu.memory_space<vmem>>, vector<8x1xf32>,
    return
  }
  func.func @transform_0(%arg0: i32) -> (i32, i32) {
    %c0_i32 = arith.constant 0 : i32
    %c0_i32_0 = arith.constant 0 : i32
    return %arg0, %c0_i32 : i32, i32
  }
  func.func @transform_1(%arg0: i32) -> (i32, i32) {
    %c0_i32 = arith.constant 0 : i32
    %c0_i32_0 = arith.constant 0 : i32
    return %arg0, %c0_i32 : i32, i32
  }
  func.func @transform_2(%arg0: i32) -> (i32, i32) {
    %c0_i32 = arith.constant 0 : i32
    %c0_i32_0 = arith.constant 0 : i32
    %c0_i32_1 = arith.constant 0 : i32
    return %c0_i32, %c0_i32_0 : i32, i32
  }
  func.func @transform_3(%arg0: i32) -> (i32, i32) {
    %c0_i32 = arith.constant 0 : i32
    %c0_i32_0 = arith.constant 0 : i32
    %c0_i32_1 = arith.constant 0 : i32
    return %c0_i32, %c0_i32_0 : i32, i32
  }
  func.func @transform_4(%arg0: i32) -> (i32, i32) {
    %c0_i32 = arith.constant 0 : i32
    %c0_i32_0 = arith.constant 0 : i32
    return %arg0, %c0_i32 : i32, i32
  }
  func.func @transform_5(%arg0: i32) -> (i32, i32) {
    %c0_i32 = arith.constant 0 : i32
    %c0_i32_0 = arith.constant 0 : i32
    return %arg0, %c0_i32 : i32, i32
  }
}

</mosaic_0001>

<bundles_post_ra>
// kernel: forward.1
= control target key start
LH: loop header
LB: loop body
LE: loop exit
PB: predicated region body
PF: predicated region fallthrough
CT: control target
= control target key end

     0   :  { %11 = vsyncpa [#allocation3], 0  ;;  %s978_s18 = smov 0   ;;  %s1084_s0 = inlined_call_operand.vmem [shape: f32[32,32], index: 0, kind: input, shape index: {}]   ;;  %s1085_s1 = inlined_call_operand.vmem [shape: f32[32,1], index: 1, kind: input, shape index: {}]   ;;  %s1086_s2 = inlined_call_operand.hbm [shape: f32[288,128], index: 2, kind: input, shape index: {}]   ;;  %s1087_s3 = inlined_call_operand.vmem [shape: f32[8,128], index: 3, kind: input, shape index: {}]   ;;  %s1088_s4 = inlined_call_operand.vmem [shape: f32[32,1], index: 4, kind: output, shape index: {0}]   ;;  %s1089_s5 = inlined_call_operand.vmem [shape: f32[32,1], index: 5, kind: output, shape index: {1}]  }
   0x1 LB: > { %s984_s19 = sadd.s32 4294967295, %s940_s18   ;;  %p678_p0 = scmp.ge.s32.totalorder %s940_s18, 1  ;;  %s940_s18 = sphi %s978_s18, %s17_s18  }
   0x2   : > { %p168_p1 = scmp.lt.s32.totalorder %s940_s18, 5  ;;  %s942_s20 = smov [#allocation2]  }
   0x3   : > { %s180_s21 = sshll.u32 %s942_s20, 4  ;;  %p1090_p3 = scmp.eq.s32.totalorder %s984_s19, 0  ;;  %s181_s21 = int_to_ptr.vmem [resolvable:$true] %s180_s21 }
   0x4   : > { %p988_p2 = pnand %p678_p0, %p168_p1  ;;  %s902_s26 = scalar_lea.hbm %s1086_s2, 4608 }
   0x5   : > { %p903_p6 = scmp.ne.s32.totalorder %s1086_s2, %s902_s26  ;;  %p909_p10 = scmp.lt.u32.totalorder %s902_s26, %s1086_s2 }
   0x6   : > { %s1092_s22 = scalar_select %p988_p2, 1, 0 }
   0x7   : > { %p874_p4 = pneg %p988_p2 }
   0x9   : > { %p997_p5 = pnand %p1090_p3, %p874_p4 }
   0xb   : > { %p904_p7 = pneg %p997_p5 }
   0xd   : > { %p905_p8 = pnand %p904_p7, %p903_p6 }
   0xf   : > { %p906_p9 = pneg %p905_p8 }
  0x11   : > { %p911_p11 = pnand %p909_p10, %p906_p9 }
  0x13   : > { %914 = shalt.err (!%p911_p11)
}
  0x14   : > { %s915_s6 = scalar_lea.vmem %s181_s21, 4608  ;;  %p923_p1 = scmp.lt.s32.totalorder %s181_s21, %s181_s21 }
  0x15   : > { %p916_p12 = scmp.ne.s32.totalorder %s181_s21, %s915_s6  ;;  %p924_p4 = scmp.lt.s32.totalorder %s915_s6, %s915_s6 }
  0x17   : > { %p918_p13 = pnand %p916_p12, %p904_p7  ;;  %p925_p3 = por %p924_p4, %p923_p1 }
  0x19   : > { %p919_p0 = pneg %p918_p13 }
  0x1b   : > { %p926_p2 = pnand %p925_p3, %p919_p0 }
  0x1d   : > { %929 = shalt.err (!%p926_p2)
}
  0x1e   : > { %s943_s7 = smov 128   ;;  %s944_s8 = smov 8  }
  0x1f   : > { %877 = dma.hbm_to_vmem [thread:$0]  (!%p997_p5), %s1086_s2, 4608, %s181_s21, [#allocation3], %s943_s7, %s943_s7, %s944_s8  }
  0x20   : > { %p1094_p6 = scmp.ne.s32.totalorder %s1092_s22, 0 }
  0x21   : > { %p1095_p8 = scmp.eq.s32.totalorder (!%p1094_p6), %s984_s19, 0 }
  0x22   : > { %213 = sbr.rel (%p1094_p6) target bundleno = 896 (0x380), region = 36 }
  0x29   : > { %935 = dma.done.wait (%p1095_p8), [#allocation3], 4608   ;;  %p1096_p7 = pmov %p1095_p8 }
  0x2a   : > { %p247_p2 = scmp.lt.s32.totalorder %s984_s19, 3  ;;  %v945_v0 = vmov 0.0|0.0   ;;  %vm946_vm0 = vmmov 0   ;;  %v947_v1 = vmov 0.0   ;;  %v269_v2 = vld [vmem:[#allocation2] sm:$0xff]  ;;  %v270_v3 = vld [vmem:[#allocation2 + $0x8] sm:$0xff] }
  0x2b   : > { %937 = vsyncadd (%p1096_p7), [#allocation3], 4294962688  ;;  %816 = vmatprep.subr.bf16.mxu0 %v945_v0  ;;  %743 = vmatprep.mubr.msk.f32.mxu0 %vm946_vm0, %v947_v1  ;;  %v271_v4 = vld [vmem:[#allocation2 + $0x10] sm:$0xff]  ;;  %v817_v5 = vpack.c.bf16 %v270_v3, %v269_v2  ;;  %v272_v6 = vld [vmem:[#allocation2 + $0x18] sm:$0xff]  ;;  %vm277_vm1 = vcmask 261120   ;;  %vm552_vm2 = vcmask 7168  }
  0x2c   : > { %822 = vmatprep.subr.bf16.mxu1 %v945_v0  ;;  %778 = vmatprep.mubr.msk.f32.mxu1 %vm946_vm0, %v947_v1  ;;  %s1098_s19 = smov (!%p247_p2, %s984_s19), 3  ;;  %v352_v7 = vld [vmem:[#allocation2 + $0x20] sm:$0xff]  ;;  %v353_v8 = vld [vmem:[#allocation2 + $0x28] sm:$0xff]  ;;  %v354_v9 = vld [vmem:[#allocation2 + $0x30] sm:$0xff]  ;;  %v820_v10 = vpack.c.bf16 %v272_v6, %v271_v4 }
  0x2d   : > { %s1029_s11 = sshll.u32 %s1098_s19, 3  ;;  %818 = vmatpush3.bf16.msra.mxu0 %v817_v5  ;;  %v823_v11 = vpack.c.bf16 %v353_v8, %v352_v7  ;;  %v355_v12 = vld [vmem:[#allocation2 + $0x38] sm:$0xff]  ;;  %v356_v14 = vld [vmem:[#allocation2 + $0x40] sm:$0xff]  ;;  %v357_v15 = vld [vmem:[#allocation2 + $0x48] sm:$0xff] }
  0x2e   : > { %819 = vmatprep.subr.bf16.mxu0 %v945_v0  ;;  %s250_s14 = scalar_lea.vmem %s1084_s0, %s1029_s11  ;;  %v826_v13 = vpack.c.bf16 %v355_v12, %v354_v9  ;;  %v829_v17 = vpack.c.bf16 %v357_v15, %v356_v14  ;;  %v358_v18 = vld [vmem:[#allocation2 + $0x50] sm:$0xff]  ;;  %v359_v19 = vld [vmem:[#allocation2 + $0x58] sm:$0xff]  ;;  %v360_v21 = vld [vmem:[#allocation2 + $0x60] sm:$0xff]  ;;  %s258_s28 = scalar_lea.vmem %s1088_s4, %s1029_s11 }
  0x2f   : > { %824 = vmatpush3.bf16.msra.mxu1 %v823_v11  ;;  %v263_v16 = vld [vmem:[%s250_s14] sm:$0xff]  ;;  %v832_v20 = vpack.c.bf16 %v359_v19, %v358_v18  ;;  %v361_v22 = vld [vmem:[#allocation2 + $0x68] sm:$0xff]  ;;  %v362_v24 = vld [vmem:[#allocation2 + $0x70] sm:$0xff]  ;;  %s254_s6 = scalar_lea.vmem %s1085_s1, %s1029_s11  ;;  %s262_s9 = scalar_lea.vmem %s1089_s5, %s1029_s11 }
  0x30   : > { %825 = vmatprep.subr.bf16.mxu1 %v945_v0  ;;  %v835_v23 = vpack.c.bf16 %v361_v22, %v360_v21  ;;  %v363_v25 = vld [vmem:[#allocation2 + $0x78] sm:$0xff]  ;;  %v364_v27 = vld [vmem:[#allocation2 + $0x80] sm:$0xff]  ;;  %v365_v28 = vld [vmem:[#allocation2 + $0x88] sm:$0xff] }
  0x31   : > { %821 = vmatpush3.bf16.msra.mxu0 %v820_v10  ;;  %v838_v26 = vpack.c.bf16 %v363_v25, %v362_v24  ;;  %v841_v29 = vpack.c.bf16 %v365_v28, %v364_v27  ;;  %v366_v30 = vld [vmem:[#allocation2 + $0x90] sm:$0xff]  ;;  %v367_v31 = vld [vmem:[#allocation2 + $0x98] sm:$0xff]  ;;  %v443_v33 = vld [vmem:[#allocation2 + $0xa0] sm:$0xff] }
  0x32   : > { %846 = vmatprep.subr.bf16.mxu0 %v945_v0  ;;  %v844_v32 = vpack.c.bf16 %v367_v31, %v366_v30  ;;  %v444_v34 = vld [vmem:[#allocation2 + $0xa8] sm:$0xff]  ;;  %v445_v35 = vld [vmem:[#allocation2 + $0xb0] sm:$0xff]  ;;  %v446_v37 = vld [vmem:[#allocation2 + $0xb8] sm:$0xff] }
  0x33   : > { %827 = vmatpush3.bf16.msra.mxu1 %v826_v13  ;;  %v847_v36 = vpack.c.bf16 %v444_v34, %v443_v33  ;;  %v850_v38 = vpack.c.bf16 %v446_v37, %v445_v35  ;;  %v447_v39 = vld [vmem:[#allocation2 + $0xc0] sm:$0xff]  ;;  %v448_v40 = vld [vmem:[#allocation2 + $0xc8] sm:$0xff]  ;;  %v449_v42 = vld [vmem:[#allocation2 + $0xd0] sm:$0xff] }
  0x34   : > { %744 = vmatmul.mubr.msk.f32.vlgmr.msra.gmra.mrb[0].mxu0 %vm277_vm1, %v263_v16  ;;  %828 = vmatprep.subr.bf16.mxu1 %v945_v0  ;;  %v853_v41 = vpack.c.bf16 %v448_v40, %v447_v39  ;;  %v450_v43 = vld [vmem:[#allocation2 + $0xd8] sm:$0xff]  ;;  %v451_v45 = vld [vmem:[#allocation2 + $0xe0] sm:$0xff]  ;;  %v452_v46 = vld [vmem:[#allocation2 + $0xe8] sm:$0xff] }
  0x35   : > { %813 = vmatprep.mubr.msk.f32.mxu0 %vm946_vm0, %v947_v1  ;;  %848 = vmatpush3.bf16.msra.mxu0 %v847_v36  ;;  %v856_v44 = vpack.c.bf16 %v450_v43, %v449_v42  ;;  %v859_v47 = vpack.c.bf16 %v452_v46, %v451_v45  ;;  %v453_v48 = vld [vmem:[#allocation2 + $0xf0] sm:$0xff]  ;;  %v454_v49 = vld [vmem:[#allocation2 + $0xf8] sm:$0xff]  ;;  %v455_v51 = vld [vmem:[#allocation2 + $0x100] sm:$0xff] }
  0x36   : > { %849 = vmatprep.subr.bf16.mxu0 %v945_v0  ;;  %v862_v50 = vpack.c.bf16 %v454_v49, %v453_v48  ;;  %v456_v52 = vld [vmem:[#allocation2 + $0x108] sm:$0xff]  ;;  %v687_v54 = vld [vmem:[%s1087_s3] ss:$0 sm:$0xff]  ;;  %v457_v59 = vld [vmem:[#allocation2 + $0x110] sm:$0xff] }
  0x37   : > { %830 = vmatpush3.bf16.msra.mxu1 %v829_v17  ;;  %v865_v53 = vpack.c.bf16 %v456_v52, %v455_v51  ;;  %v458_v60 = vld [vmem:[#allocation2 + $0x118] sm:$0xff]  ;;  %v689_v62 = vld [vmem:[%s1087_s3 + $0x1] ss:$0 sm:$0xff]  ;;  %v690_v3 = vld [vmem:[%s1087_s3 + $0x2] ss:$0 sm:$0xff] }
  0x38   : > { %831 = vmatprep.subr.bf16.mxu1 %v945_v0  ;;  %v868_v61 = vpack.c.bf16 %v458_v60, %v457_v59  ;;  %v691_v7 = vld [vmem:[%s1087_s3 + $0x3] ss:$0 sm:$0xff]  ;;  %v692_v10 = vld [vmem:[%s1087_s3 + $0x4] ss:$0 sm:$0xff] }
  0x39   : > { %851 = vmatpush3.bf16.msra.mxu0 %v850_v38  ;;  %v554_v19 = vld [vmem:[%s254_s6] sm:$0xff] }
  0x3a   : > { %852 = vmatprep.subr.bf16.mxu0 %v945_v0  ;;  %v563_v22 = vsub.f32 1.0, %v554_v19 }
  0x3b   : > { %833 = vmatpush3.bf16.msra.mxu1 %v832_v20 }
  0x3c   : > { %834 = vmatprep.subr.bf16.mxu1 %v945_v0 }
  0x3d   : > { %854 = vmatpush3.bf16.msra.mxu0 %v853_v41 }
  0x3e   : > { %855 = vmatprep.subr.bf16.mxu0 %v945_v0 }
  0x3f   : > { %836 = vmatpush3.bf16.msra.mxu1 %v835_v23 }
  0x40   : > { %837 = vmatprep.subr.bf16.mxu1 %v945_v0 }
  0x41   : > { %857 = vmatpush3.bf16.msra.mxu0 %v856_v44 }
  0x42   : > { %858 = vmatprep.subr.bf16.mxu0 %v945_v0 }
  0x43   : > { %839 = vmatpush3.bf16.msra.mxu1 %v838_v26 }
  0x44   : > { %840 = vmatprep.subr.bf16.mxu1 %v945_v0 }
  0x45   : > { %860 = vmatpush3.bf16.msra.mxu0 %v859_v47 }
  0x46   : > { %861 = vmatprep.subr.bf16.mxu0 %v945_v0 }
  0x47   : > { %842 = vmatpush3.bf16.msra.mxu1 %v841_v29 }
  0x48   : > { %843 = vmatprep.subr.bf16.mxu1 %v945_v0 }
  0x49   : > { %863 = vmatpush3.bf16.msra.mxu0 %v862_v50 }
  0x4a   : > { %864 = vmatprep.subr.bf16.mxu0 %v945_v0 }
  0x4b   : > { %845 = vmatpush3.bf16.msra.mxu1 %v844_v32 }
  0x4d   : > { %866 = vmatpush3.bf16.msra.mxu0 %v865_v53 }
  0x4e   : > { %867 = vmatprep.subr.bf16.mxu0 %v945_v0 }
  0x51   : > { %869 = vmatpush3.bf16.msra.mxu0 %v868_v61 }
 0x107   : > { %v347_v55 = vpop.f32.mrb[0].mxu0 }
 0x108   : > { %v348_v56 = vadd.f32 %v687_v54, %v347_v55  ;;  %v745_v57 = vpop.f32.mrb[1].mxu0 }
 0x10a   : > { %v351_v58 = vmax.f32 %v348_v56, 0.0 }
 0x10c   : > { %779 = vmatmul.mubr.f32.vlgmr.msra.gmra.mrb[0].mxu1 %v351_v58 }
 0x1df   : > { %v438_v63 = vpop.f32.mrb[0].mxu1 }
 0x1e0   : > { %v439_v1 = vadd.f32 %v689_v62, %v438_v63  ;;  %v780_v0 = vpop.f32.mrb[1].mxu1 }
 0x1e2   : > { %v442_v2 = vmax.f32 %v439_v1, 0.0 }
 0x1e4   : > { %814 = vmatmul.mubr.f32.vlgmr.msra.gmra.mrb[2].mxu0 %v442_v2 }
 0x2b7   : > { %v529_v4 = vpop.f32.mrb[2].mxu0 }
 0x2b8   : > { %v530_v5 = vadd.f32 %v690_v3, %v529_v4  ;;  %v815_v6 = vpop.f32.mrb[3].mxu0 }
 0x2ba   : > { %v533_v8 = vmax.f32 %v530_v5, 0.0 }
 0x2bc   : > { %v538_v9 = vmul.f32 %v691_v7, %v533_v8 }
 0x2be   : > { %539 = vadd.xlane.f32.xlu0 %v538_v9 }
 0x34b   : > { %v540_v11 = vpop.xlane.xlu0 %539 }
 0x34c   : > { %v545_v12 = vadd.f32 %v692_v10, %v540_v11 }
 0x34e   : > { %v693_v13 = vmul.f32 -1.442695, %v545_v12 }
 0x350   : > { %894 = vpow2.f32 %v693_v13 }
 0x35a   : > { %v895_v14 = vpop.eup %894 }
 0x35b   : > { %v549_v15 = vadd.f32 1.0, %v895_v14 }
 0x35d   : > { %896 = vrcp.f32 %v549_v15 }
 0x367   : > { %v897_v16 = vpop.eup %896 }
 0x368   : > { %553 = vst.msk [vmem:[%s258_s28] sm:$0xff] %vm552_vm2, %v897_v16  ;;  %898 = vlog2.f32 %v897_v16  ;;  %v558_v17 = vsub.f32 1.0, %v897_v16 }
 0x36a   : > { %900 = vlog2.f32 %v558_v17 }
 0x372   : > { %v899_v18 = vpop.eup %898 }
 0x373   : > { %v556_v20 = vmul.f32 0.6931472, %v899_v18 }
 0x374   : > { %v901_v21 = vpop.eup %900 }
 0x375   : > { %v557_v23 = vmax.f32 %v556_v20, -100.0  ;;  %v560_v24 = vmul.f32 0.6931472, %v901_v21 }
 0x377   : > { %v561_v25 = vmax.f32 %v560_v24, -100.0  ;;  %v562_v26 = vmul.f32 %v557_v23, %v554_v19 }
 0x379   : > { %v564_v27 = vmul.f32 %v563_v22, %v561_v25 }
 0x37b   : > { %v565_v28 = vadd.f32 %v564_v27, %v562_v26 }
 0x37d   : > { %v566_v29 = vsub.f32 0.0, %v565_v28 }
 0x37f   : > { %567 = vst.msk [vmem:[%s262_s9] sm:$0xff] %vm552_vm2, %v566_v29 }
 0x380 PF: > { %s17_s18 = sadd.s32 1, %s940_s18  }
 0x381   : > { %p14_p3 = scmp.ge.s32.totalorder %s17_s18, 6  }
 0x383   :  { %16 = sbr.rel (!%p14_p3) target bundleno = 1 (0x1), region = 86 }
 0x38a   :  { %601 = vsyncpa [#allocation3], 1 }
 0x38b   :  { %603 = vsyncpa [#allocation3 + $0x1], 1 }

</bundles_post_ra>
